<compile_context>
chip_gen: v7x
topology: tpu7x:2x2x1
jax: 0.10.0
libtpu: 0.0.40
codegen_flags: <defaults>
</compile_context>

<pallas_src>
import jax
import jax.numpy as jnp
from jax import lax
from jax.experimental import pallas as pl
from jax.experimental.pallas import tpu as pltpu


def _round_up(x, m):
    return ((x + m - 1) // m) * m


def _pick_tile(n_p, multiple, max_tile, prefer_even=False):
    """Largest divisor of n_p that is a multiple of `multiple` and <= max_tile.
    With prefer_even, favor tiles giving an even block count (v7x megacore)."""
    cands = [t for t in range(multiple, min(n_p, max_tile) + 1, multiple)
             if n_p % t == 0]
    if not cands:
        return n_p
    if prefer_even:
        even = [t for t in cands if (n_p // t) % 2 == 0]
        if even:
            return max(even)
    return max(cands)


# ---------------------------------------------------------------------------
# Kernel 1: scaled support   s' = d^-1/2 * (x @ W^T)   (emitted in bf16)
# ---------------------------------------------------------------------------
def _support_kernel(x_ref, wt_ref, dinv_ref, s_ref):
    # x_ref: (tm, F_in) f32, wt_ref: (F_in, F_out_p) f32 (pre-transposed),
    # dinv_ref: (tm, 1) f32, s_ref: (tm, F_out_p) bf16.
    s = jnp.dot(x_ref[...], wt_ref[...], preferred_element_type=jnp.float32)
    s_ref[...] = (dinv_ref[...] * s).astype(s_ref.dtype)


# ---------------------------------------------------------------------------
# Kernel 2: aggregation   out = relu(d^-1/2 * (A_hat @ s'))
#   grid = (rows, k); the f32 output block is VMEM-resident across k and is
#   used directly as the accumulator (no scratch).
# ---------------------------------------------------------------------------
def _aggregate_kernel(adj_ref, sp_ref, dinv_ref, o_ref):
    k = pl.program_id(1)

    @pl.when(k == 0)
    def _init():
        o_ref[...] = jnp.zeros_like(o_ref)

    # bf16 x bf16 -> f32 accumulation on the MXU.
    o_ref[...] += jnp.dot(adj_ref[...], sp_ref[...],
                          preferred_element_type=jnp.float32)

    @pl.when(k == pl.num_programs(1) - 1)
    def _finalize():
        o_ref[...] = jnp.maximum(dinv_ref[...] * o_ref[...], 0.0)


# ---------------------------------------------------------------------------
# Wrapper
# ---------------------------------------------------------------------------
def simple_graph_conv(x, adj, weight):
    """x: (N, F_in), adj: (N, N), weight: (F_out, F_in) -> (N, F_out)."""
    n, f_in = x.shape
    f_out = weight.shape[0]
    f_out_p = _round_up(f_out, 128)               # lane-dense output stores

    # ---- tile selection ----------------------------------------------------
    if n <= 512:
        n_p = _round_up(max(n, 8), 8)             # single full block
        tm = tk = n_p
    else:
        n_p = _round_up(n, 128)                   # minimal lane-aligned pad
        tk = _pick_tile(n_p, 128, 1024)           # adj lane dim / k tile
        tm = _pick_tile(n_p, 8, 512, prefer_even=True)  # even row blocks

    # ---- wrapper-side layout plumbing (one pass over each array) -----------
    # d^-1/2 with self loop, from the UNPADDED adj; padded rows get 1.0.
    dinv_rows = lax.rsqrt(
        jnp.sum(adj.astype(jnp.float32), axis=1, keepdims=True) + 1.0)
    if n == n_p:
        d_inv_sqrt = dinv_rows
        adj_bf = adj.astype(jnp.bfloat16)
        x_f = x.astype(jnp.float32)
    else:
        d_inv_sqrt = jnp.ones((n_p, 1), jnp.float32).at[:n, :].set(dinv_rows)
        adj_bf = jnp.zeros((n_p, n_p), jnp.bfloat16).at[:n, :n].set(
            adj.astype(jnp.bfloat16))
        x_f = jnp.zeros((n_p, f_in), jnp.float32).at[:n, :].set(
            x.astype(jnp.float32))
    # Fold the self loop (+I) into the adjacency diagonal (exact in bf16 for
    # 0/1 adjacency); padded diagonal entries stay 0.
    diag = jnp.arange(n)
    adj_bf = adj_bf.at[diag, diag].add(jnp.bfloat16(1.0))

    # Pre-transpose + lane-pad the Linear weight: (F_out, F_in)->(F_in, F_out_p)
    wt = jnp.zeros((f_in, f_out_p), jnp.float32).at[:, :f_out].set(
        weight.T.astype(jnp.float32))

    # ---- kernel 1: s' = d^-1/2 * (x @ W^T) ----------------------------------
    # TODO(synk): add a k-axis over f_in (accumulator pattern) if f_in grows
    # large enough to pressure v7x's 32 MiB scoped VMEM.
    sprime = pl.pallas_call(
        _support_kernel,
        out_shape=jax.ShapeDtypeStruct((n_p, f_out_p), jnp.bfloat16),
        grid=(n_p // tm,),
        in_specs=[
            pl.BlockSpec((tm, f_in), lambda i: (i, 0)),
            pl.BlockSpec((f_in, f_out_p), lambda i: (0, 0)),
            pl.BlockSpec((tm, 1), lambda i: (i, 0)),
        ],
        out_specs=pl.BlockSpec((tm, f_out_p), lambda i: (i, 0)),
        compiler_params=pltpu.CompilerParams(
            dimension_semantics=("parallel",)),
    )(x_f, wt, d_inv_sqrt)

    # ---- kernel 2: out = relu(d^-1/2 * (A_hat @ s')) ------------------------
    cost = pl.CostEstimate(
        flops=2 * n_p * n_p * f_out_p,
        transcendentals=0,
        bytes_accessed=(n_p * n_p * 2                       # A_hat (bf16)
                        + (n_p // tm) * n_p * f_out_p * 2   # s' re-reads
                        + n_p * f_out_p * 4),               # output (f32)
    )
    out_p = pl.pallas_call(
        _aggregate_kernel,
        out_shape=jax.ShapeDtypeStruct((n_p, f_out_p), jnp.float32),
        grid=(n_p // tm, n_p // tk),
        in_specs=[
            pl.BlockSpec((tm, tk), lambda i, k: (i, k)),        # A_hat tile
            pl.BlockSpec((tk, f_out_p), lambda i, k: (k, 0)),   # s'[k]
            pl.BlockSpec((tm, 1), lambda i, k: (i, 0)),         # d^-1/2 rows
        ],
        out_specs=pl.BlockSpec((tm, f_out_p), lambda i, k: (i, 0)),
        compiler_params=pltpu.CompilerParams(
            dimension_semantics=("parallel", "arbitrary")),
        cost_estimate=cost,
    )(adj_bf, sprime, d_inv_sqrt)

    return out_p[:n, :f_out]


# ---------------------------------------------------------------------------
# Pure-JAX reference (mirrors the PyTorch module exactly)
# ---------------------------------------------------------------------------
def _reference(x, adj, weight):
    a_hat = adj + jnp.eye(adj.shape[0], dtype=adj.dtype)
    d = jnp.sum(a_hat, axis=1)
    d_inv_sqrt = jnp.diag(d ** -0.5)
    a_norm = d_inv_sqrt @ a_hat @ d_inv_sqrt
    support = x @ weight.T
    return jax.nn.relu(a_norm @ support)


def _make_inputs(key, n, f_in, f_out):
    k_x, k_adj, k_w = jax.random.split(key, 3)
    x = jax.random.normal(k_x, (n, f_in), dtype=jnp.float32)
    # Symmetric 0/1 adjacency with no self loops (typical GCN input).
    a_raw = (jax.random.uniform(k_adj, (n, n)) > 0.5).astype(jnp.float32)
    adj = jnp.triu(a_raw, 1)
    adj = adj + adj.T
    weight = jax.random.normal(k_w, (f_out, f_in), dtype=jnp.float32) * 0.1
    return x, adj, weight


if __name__ == "__main__":
    key = jax.random.PRNGKey(0)

    # Small case (matches the module's toy usage): single-block path.
    x, adj, w = _make_inputs(key, n=8, f_in=32, f_out=16)
    out = simple_graph_conv(x, adj, w)
    jax.block_until_ready(out)
    ref = _reference(x, adj, w)
    assert out.shape == ref.shape
    assert jnp.allclose(out, ref, atol=1e-2, rtol=1e-2), "mismatch (small)"

    # Larger case: exercises 128-padding (1100 -> 1152), divisor tile
    # selection (tm=288, tk=384), bf16 streams, and the k-accumulator path.
    x2, adj2, w2 = _make_inputs(jax.random.PRNGKey(1), n=1100, f_in=64,
                                f_out=32)
    out2 = simple_graph_conv(x2, adj2, w2)
    jax.block_until_ready(out2)
    ref2 = _reference(x2, adj2, w2)
    assert out2.shape == ref2.shape
    assert jnp.allclose(out2, ref2, atol=1e-2, rtol=1e-2), "mismatch (tiled)"

    print("KERNEL_OK")
</pallas_src>

<mosaic_0001>
module attributes {stable_mosaic.version = 11 : i64} {
  func.func @_support_kernel(%arg0: i32, %arg1: memref<8x32xf32, #tpu.memory_space<vmem>>, %arg2: memref<32x128xf32, #tpu.memory_space<vmem>>, %arg3: memref<8x1xf32, #tpu.memory_space<vmem>>, %arg4: memref<8x128xbf16, #tpu.memory_space<vmem>>) attributes {dimension_semantics = [#tpu.dimension_semantics<parallel>], iteration_bounds = array<i64: 1>, scalar_prefetch = 0 : i64, scratch_operands = 0 : i64, tpu.core_type = #tpu.core_type<tc>, window_params = [{transform_indices = @transform_0, window_bounds = array<i64: 8, 32>}, {pipeline_mode = #tpu.pipeline_mode<synchronous>, transform_indices = @transform_1, window_bounds = array<i64: 32, 128>}, {transform_indices = @transform_2, window_bounds = array<i64: 8, 1>}, {transform_indices = @transform_3, window_bounds = array<i64: 8, 128>}]} {
    %c0 = arith.constant 0 : index
    %c0_0 = arith.constant 0 : index
    %0 = vector.load %arg1[%c0, %c0_0] : memref<8x32xf32, #tpu.memory_space<vmem>>, vector<8x32xf32>
    %c0_1 = arith.constant 0 : index
    %c0_2 = arith.constant 0 : index
    %1 = vector.load %arg2[%c0_1, %c0_2] : memref<32x128xf32, #tpu.memory_space<vmem>>, vector<32x128xf32>
    %cst = arith.constant dense<0.000000e+00> : vector<8x128xf32>
    %2 = tpu.matmul %0, %1, %cst {dimension_numbers = #tpu.dot_dimension_numbers<[1], [0], [0], [1], [0, 0, 1, 1], [], []>} : vector<8x32xf32>, vector<32x128xf32>, vector<8x128xf32> -> vector<8x128xf32>
    %c0_3 = arith.constant 0 : index
    %c0_4 = arith.constant 0 : index
    %3 = vector.load %arg3[%c0_3, %c0_4] : memref<8x1xf32, #tpu.memory_space<vmem>>, vector<8x1xf32>
    %4 = vector.broadcast %3 : vector<8x1xf32> to vector<8x128xf32>
    %5 = arith.mulf %4, %2 : vector<8x128xf32>
    %6 = arith.truncf %5 : vector<8x128xf32> to vector<8x128xbf16>
    %c0_5 = arith.constant 0 : index
    %c0_6 = arith.constant 0 : index
    %7 = vector.load %arg4[%c0_5, %c0_6] : memref<8x128xbf16, #tpu.memory_space<vmem>>, vector<8x128xbf16>
    tpu.vector_store %arg4[%c0_5, %c0_6], %6 {strides = array<i32>} : memref<8x128xbf16, #tpu.memory_space<vmem>>, vector<8x128xbf16>,
    return
  }
  func.func @transform_0(%arg0: i32) -> (i32, i32) {
    %c0_i32 = arith.constant 0 : i32
    %c0_i32_0 = arith.constant 0 : i32
    return %arg0, %c0_i32 : i32, i32
  }
  func.func @transform_1(%arg0: i32) -> (i32, i32) {
    %c0_i32 = arith.constant 0 : i32
    %c0_i32_0 = arith.constant 0 : i32
    %c0_i32_1 = arith.constant 0 : i32
    return %c0_i32, %c0_i32_0 : i32, i32
  }
  func.func @transform_2(%arg0: i32) -> (i32, i32) {
    %c0_i32 = arith.constant 0 : i32
    %c0_i32_0 = arith.constant 0 : i32
    return %arg0, %c0_i32 : i32, i32
  }
  func.func @transform_3(%arg0: i32) -> (i32, i32) {
    %c0_i32 = arith.constant 0 : i32
    %c0_i32_0 = arith.constant 0 : i32
    return %arg0, %c0_i32 : i32, i32
  }
}

</mosaic_0001>

<bundles_post_ra>
// kernel: tpu_custom_call.1
= control target key start
LH: loop header
LB: loop body
LE: loop exit
PB: predicated region body
PF: predicated region fallthrough
CT: control target
= control target key end

     0   :  { %8 = vsyncpa [#allocation3], 0  ;;  %s270_s0 = inlined_call_operand.vmem [shape: f32[8,32], index: 0, kind: input, shape index: {}]   ;;  %s271_s1 = inlined_call_operand.hbm [shape: f32[32,128], index: 1, kind: input, shape index: {}]   ;;  %s272_s2 = inlined_call_operand.vmem [shape: f32[8,1], index: 2, kind: input, shape index: {}]   ;;  %s273_s3 = inlined_call_operand.hbm [shape: bf16[8,128], index: 3, kind: output, shape index: {}]  }
   0x1   :  { %9 = vsyncpa [#allocation4], 0  ;;  %s212_s12 = smov [#allocation2]   ;;  %s164_s16 = scalar_lea.hbm %s271_s1, 512 }
   0x2   :  { %s17_s13 = sshll.u32 %s212_s12, 4  ;;  %p165_p0 = scmp.ne.s32.totalorder %s271_s1, %s164_s16  ;;  %s18_s13 = int_to_ptr.vmem [resolvable:$true] %s17_s13 }
   0x3   :  { %p168_p1 = scmp.lt.u32.totalorder %s164_s16, %s271_s1 }
   0x5   :  { %p170_p2 = pnand %p168_p1, %p165_p0 }
   0x7   :  { %173 = shalt.err (!%p170_p2)
}
   0x8   :  { %s174_s21 = scalar_lea.vmem %s18_s13, 512  ;;  %p179_p4 = scmp.lt.s32.totalorder %s18_s13, %s18_s13 }
   0x9   :  { %p175_p3 = scmp.ne.s32.totalorder %s18_s13, %s174_s21  ;;  %p180_p5 = scmp.lt.s32.totalorder %s174_s21, %s174_s21 }
   0xb   :  { %p181_p6 = por %p180_p5, %p179_p4 }
   0xd   :  { %p182_p7 = pnand %p181_p6, %p175_p3 }
   0xf   :  { %185 = shalt.err (!%p182_p7)
}
  0x10   :  { %s213_s22 = smov 128   ;;  %s214_s23 = smov 8  }
  0x11   :  { %23 = dma.hbm_to_vmem [thread:$0]  %s271_s1, 512, %s18_s13, [#allocation3], %s213_s22, %s213_s22, %s214_s23  }
  0x12   :  { %208 = dma.done.wait [#allocation3], 512  }
  0x13   :  { %209 = vsyncadd [#allocation3], 4294966784  ;;  %v215_v0 = vmov 0.0|0.0   ;;  %vm216_vm0 = vmmov 0   ;;  %v217_v1 = vmov 0.0   ;;  %v218_v2 = vmov 0  }
  0x14   :  { %149 = vmatprep.subr.bf16.mxu0 %v215_v0  ;;  %146 = vmatprep.mubr.msk.f32.mxu0 %vm216_vm0, %v217_v1  ;;  %v30_v3 = vld [vmem:[#allocation2] sm:$0xff]  ;;  %v31_v4 = vld [vmem:[#allocation2 + $0x8] sm:$0xff]  ;;  %v32_v5 = vld [vmem:[#allocation2 + $0x10] sm:$0xff]  ;;  %vm34_vm1 = vcmask 261120   ;;  %s219_s29 = smov [#allocation5]  }
  0x15   :  { %163 = vset.pattern.permute.xlu0 %v218_v2  ;;  %v150_v6 = vpack.c.bf16 %v31_v4, %v30_v3  ;;  %v33_v7 = vld [vmem:[#allocation2 + $0x18] sm:$0xff]  ;;  %v108_v8 = vld [vmem:[%s272_s2] sm:$0xff]  ;;  %s123_s30 = sshll.u32 %s219_s29, 4  ;;  %s124_s30 = int_to_ptr.vmem [resolvable:$true] %s123_s30 }
  0x16   :  { %111 = vperm.xlu0 %163, %v108_v8   ;;  %v153_v9 = vpack.c.bf16 %v33_v7, %v32_v5  ;;  %v29_v10 = vld [vmem:[%s270_s0] sm:$0xff]  ;;  %s186_s2 = scalar_lea.vmem %s124_s30, 64  ;;  %p191_p9 = scmp.lt.s32.totalorder %s124_s30, %s124_s30 }
  0x17   :  { %151 = vmatpush3.bf16.msra.mxu0 %v150_v6  ;;  %p187_p8 = scmp.ne.s32.totalorder %s124_s30, %s186_s2  ;;  %p192_p10 = scmp.lt.s32.totalorder %s186_s2, %s186_s2 }
  0x18   :  { %152 = vmatprep.subr.bf16.mxu0 %v215_v0 }
  0x19   :  { %p193_p11 = por %p192_p10, %p191_p9 }
  0x1b   :  { %154 = vmatpush3.bf16.msra.mxu0 %v153_v9  ;;  %p194_p12 = pnand %p193_p11, %p187_p8 }
  0x1e   :  { %147 = vmatmul.mubr.msk.f32.vlgmr.msra.gmra.mrb[0].mxu0 %vm34_vm1, %v29_v10 }
  0x95   :  { %v112_v11 = vpop.permute.xlu0 %111 }
  0xf1   :  { %v104_v12 = vpop.f32.mrb[0].mxu0 }
  0xf2   :  { %v114_v13 = vmul.f32 %v112_v11, %v104_v12  ;;  %v148_v14 = vpop.f32.mrb[1].mxu0 }
  0xf4   :  { %v115_v15 = vpack.c.bf16 %v114_v13, %v114_v13 }
  0xf6   :  { %116 = vst [vmem:[#allocation5] sm:$0xf] %v115_v15 }
  0xf7   :  { %197 = shalt.err (!%p194_p12)
}
  0xf8   :  { %s198_s5 = scalar_lea.hbm %s273_s3, 64 }
  0xf9   :  { %p199_p13 = scmp.ne.s32.totalorder %s273_s3, %s198_s5  ;;  %p202_p0 = scmp.lt.u32.totalorder %s198_s5, %s273_s3 }
  0xfb   :  { %p204_p1 = pnand %p202_p0, %p199_p13 }
  0xfd   :  { %207 = shalt.err (!%p204_p1)
}
  0xfe   :  { %126 = dma.vmem_to_hbm [thread:$0]  %s124_s30, 64, %s273_s3, [#allocation4]  }
  0xff   :  { %210 = dma.done.wait [#allocation4], 64  }
 0x100   :  { %211 = vsyncadd [#allocation4], 4294967232 }
 0x101   :  { %130 = vsyncpa [#allocation3], 1 }
 0x102   :  { %131 = vsyncpa [#allocation4], 1 }

</bundles_post_ra>
